<compile_context>
chip_gen: v7x
topology: tpu7x:2x2x1
jax: 0.10.0
libtpu: 0.0.40
codegen_flags: <defaults>
</compile_context>

<pallas_src>
import jax
import jax.numpy as jnp
from jax.experimental import pallas as pl
from jax.experimental.pallas import tpu as pltpu


# ----------------------------------------------------------------------------
# Fused kernel: conv1 -> BN1 -> ReLU -> conv2 -> BN2 -> (+x) -> ReLU
# Activations use the lane-dense layout (rows = batch*H, lanes = W*C).
# ----------------------------------------------------------------------------
def _residual_block_kernel(x_ref, a1_ref, b1_ref, a2_ref, b2_ref, out_ref):
    B, H, WC = out_ref.shape          # B = batch items per grid step
    M = B * H                         # stacked matmul M dimension

    x = x_ref[...].reshape(M, WC)     # (M, WC) f32, no data movement (H % 8 == 0)

    # Per-item SAME-padding masks.  Row r of the stacked slab belongs to image
    # r // H; rows with (r % H) == 0 have no row above, (r % H) == H-1 none
    # below.  The same masks also stop rolls from bleeding across batch items.
    row_in_item = jax.lax.broadcasted_iota(jnp.int32, (M, WC), 0) % H
    has_above = row_in_item != 0
    has_below = row_in_item != (H - 1)

    def conv3x3(v_f32, a_ref):
        # kh = 0 needs input row r-1: roll down by one row, zero first rows.
        dn = jnp.where(has_above, pltpu.roll(v_f32, shift=1, axis=0), 0.0)
        # kh = 2 needs input row r+1: roll up by one row, zero last rows.
        up = jnp.where(has_below, pltpu.roll(v_f32, shift=M - 1, axis=0), 0.0)
        # One fused K = 3*WC matmul (kh blocks concatenated along lanes).
        lhs = jnp.concatenate([dn, v_f32, up], axis=-1).astype(jnp.bfloat16)
        return jnp.dot(lhs, a_ref[...], preferred_element_type=jnp.float32)

    # conv1 (+ folded BN1 scale) -> BN1 bias -> ReLU  (h stays in registers)
    h = jnp.maximum(conv3x3(x, a1_ref) + b1_ref[...], 0.0)
    # conv2 (+ folded BN2 scale) -> BN2 bias -> identity residual -> ReLU
    y = conv3x3(h, a2_ref) + b2_ref[...] + x
    out_ref[...] = jnp.maximum(y, 0.0).reshape(B, H, WC).astype(out_ref.dtype)


# ----------------------------------------------------------------------------
# Wrappers
# ----------------------------------------------------------------------------
def _pick_batch_block(n, h, target_rows=128):
    """Batch items per grid step: aim for ~128 matmul rows, keep >=2 steps."""
    b = max(1, min(n, target_rows // max(h, 1)))
    b = min(b, max(1, n // 2))            # leave >=2 grid steps when possible
    while n % b:
        b -= 1
    return b


def residual_block_lane_dense(x_ld, kparams, *, b_blk=None):
    """Core entry point: x_ld is (N, H, W*C) f32 lane-dense; returns same."""
    N, H, WC = x_ld.shape
    if b_blk is None:
        b_blk = _pick_batch_block(N, H)
    assert N % b_blk == 0

    a1, b1 = kparams["a1"], kparams["b1"]   # (3*WC, WC) bf16 / (1, WC) f32
    a2, b2 = kparams["a2"], kparams["b2"]

    # NOTE: a1/a2 have constant index_maps; at much larger WC (v7x's 64 MiB
    # VMEM) request single buffering for them (pipeline_mode=pl.Buffered(1))
    # and set vmem_limit_bytes explicitly.  At WC=128 they are ~96 KiB each.
    return pl.pallas_call(
        _residual_block_kernel,
        out_shape=jax.ShapeDtypeStruct((N, H, WC), jnp.float32),
        grid=(N // b_blk,),
        in_specs=[
            pl.BlockSpec((b_blk, H, WC), lambda n: (n, 0, 0)),  # x (lane-dense)
            pl.BlockSpec((3 * WC, WC), lambda n: (0, 0)),       # banded w1 bf16
            pl.BlockSpec((1, WC), lambda n: (0, 0)),            # BN1 bias
            pl.BlockSpec((3 * WC, WC), lambda n: (0, 0)),       # banded w2 bf16
            pl.BlockSpec((1, WC), lambda n: (0, 0)),            # BN2 bias
        ],
        out_specs=pl.BlockSpec((b_blk, H, WC), lambda n: (n, 0, 0)),
        compiler_params=pltpu.CompilerParams(
            dimension_semantics=("parallel",)),
    )(x_ld, a1, b1, a2, b2)


def residual_block_forward(x_nchw, kparams):
    """NCHW interface (ResidualBlock.forward, stride=1, identity shortcut).

    The NCHW <-> lane-dense conversions are kept only for interface
    compatibility; keep activations lane-dense across blocks in a real
    pipeline to avoid these extra HBM passes.
    """
    N, C, H, W = x_nchw.shape
    x_ld = jnp.transpose(x_nchw, (0, 2, 3, 1)).reshape(N, H, W * C)
    out_ld = residual_block_lane_dense(x_ld, kparams)
    return jnp.transpose(out_ld.reshape(N, H, W, C), (0, 3, 1, 2))


# ----------------------------------------------------------------------------
# Parameter preparation (BN folding + banded conv weights)
# ----------------------------------------------------------------------------
def _fold_bn(gamma, beta, mean, var, eps=1e-5):
    scale = gamma / jnp.sqrt(var + eps)
    bias = beta - mean * scale
    return scale, bias


def _banded_weights(w_hwio, scale, W):
    """Fold a 3x3 SAME conv (+ per-Cout BN scale) into 3 banded matrices.

    Returns A of shape (3, W*Cin, W*Cout) with
      A[kh, xw*Cin + ci, x*Cout + co] = w[kh, xw-x+1, ci, co] * scale[co]
    for |xw - x| <= 1; taps falling off the left/right edge are dropped,
    which is exactly what zero padding would contribute.
    (For large W*C switch to width tiles with a 1-pixel halo so the band and
    the weight matrix stay 128-lane wide instead of growing quadratically.)
    """
    _, _, cin, cout = w_hwio.shape
    wf = w_hwio * scale.reshape(1, 1, 1, cout)
    A = jnp.zeros((3, W, cin, W, cout), jnp.float32)
    for x in range(W):
        for kw in range(3):
            xw = x + kw - 1
            if 0 <= xw < W:
                A = A.at[:, xw, :, x, :].set(wf[:, kw, :, :])
    return A.reshape(3, W * cin, W * cout)


def prepare_kernel_params(raw, W):
    """Fold BN (inference stats) into conv weights / lane-tiled biases."""
    s1, b1 = _fold_bn(raw["g1"], raw["beta1"], raw["m1"], raw["v1"])
    s2, b2 = _fold_bn(raw["g2"], raw["beta2"], raw["m2"], raw["v2"])
    c = s1.shape[0]
    wc = W * c
    return dict(
        a1=_banded_weights(raw["w1"], s1, W).reshape(3 * wc, wc).astype(jnp.bfloat16),
        a2=_banded_weights(raw["w2"], s2, W).reshape(3 * wc, wc).astype(jnp.bfloat16),
        b1=jnp.tile(b1, W).reshape(1, wc),
        b2=jnp.tile(b2, W).reshape(1, wc),
    )


def make_raw_params(key, c):
    """Deterministic synthetic conv weights + BatchNorm statistics."""
    ks = jax.random.split(key, 10)
    n = jax.random.normal
    return dict(
        w1=0.1 * n(ks[0], (3, 3, c, c), jnp.float32),   # HWIO
        w2=0.1 * n(ks[1], (3, 3, c, c), jnp.float32),
        g1=1.0 + 0.1 * n(ks[2], (c,), jnp.float32),
        beta1=0.1 * n(ks[3], (c,), jnp.float32),
        m1=0.05 * n(ks[4], (c,), jnp.float32),
        v1=0.5 + jnp.abs(n(ks[5], (c,), jnp.float32)),
        g2=1.0 + 0.1 * n(ks[6], (c,), jnp.float32),
        beta2=0.1 * n(ks[7], (c,), jnp.float32),
        m2=0.05 * n(ks[8], (c,), jnp.float32),
        v2=0.5 + jnp.abs(n(ks[9], (c,), jnp.float32)),
    )


# ----------------------------------------------------------------------------
# Pure-JAX reference (lax.conv).  Operands are rounded to bf16 at the same
# points as in the kernel so the comparison isolates kernel bugs from the
# expected bf16-matmul rounding.
# ----------------------------------------------------------------------------
def reference_forward(x_nchw, raw):
    dn = ("NCHW", "HWIO", "NCHW")
    s1, b1 = _fold_bn(raw["g1"], raw["beta1"], raw["m1"], raw["v1"])
    s2, b2 = _fold_bn(raw["g2"], raw["beta2"], raw["m2"], raw["v2"])

    def bf16(v):
        return v.astype(jnp.bfloat16).astype(jnp.float32)

    def conv(x, w):
        return jax.lax.conv_general_dilated(
            x, w, (1, 1), "SAME", dimension_numbers=dn,
            precision=jax.lax.Precision.HIGHEST)

    def per_chan(v):
        return v.reshape(1, -1, 1, 1)

    w1f = bf16(raw["w1"] * s1.reshape(1, 1, 1, -1))
    w2f = bf16(raw["w2"] * s2.reshape(1, 1, 1, -1))
    h = jnp.maximum(conv(bf16(x_nchw), w1f) + per_chan(b1), 0.0)
    y = conv(bf16(h), w2f) + per_chan(b2) + x_nchw
    return jnp.maximum(y, 0.0)


if __name__ == "__main__":
    key = jax.random.PRNGKey(0)
    k_x, k_p = jax.random.split(key)

    # Identity shortcut => inchannel == outchannel.  C=8, W=16 makes the
    # lane-dense feature row W*C = 128 (one full vreg lane width); N=8 gives
    # a batch-blocked grid of 2 steps x 4 images (M = 64 matmul rows each).
    N, C, H, W = 8, 8, 16, 16
    x = jax.random.normal(k_x, (N, C, H, W), jnp.float32)

    raw = make_raw_params(k_p, C)
    kparams = prepare_kernel_params(raw, W)

    out = jax.block_until_ready(residual_block_forward(x, kparams))
    ref = jax.block_until_ready(reference_forward(x, raw))

    assert out.shape == (N, C, H, W)
    max_err = float(jnp.max(jnp.abs(out - ref)))
    assert jnp.allclose(out, ref, atol=2e-3, rtol=2e-3), f"mismatch: {max_err}"

    print("KERNEL_OK")
</pallas_src>

<mosaic_0001>
module attributes {stable_mosaic.version = 11 : i64} {
  func.func @_residual_block_kernel(%arg0: i32, %arg1: memref<4x16x128xf32, #tpu.memory_space<vmem>>, %arg2: memref<384x128xbf16, #tpu.memory_space<vmem>>, %arg3: memref<1x128xf32, #tpu.memory_space<vmem>>, %arg4: memref<384x128xbf16, #tpu.memory_space<vmem>>, %arg5: memref<1x128xf32, #tpu.memory_space<vmem>>, %arg6: memref<4x16x128xf32, #tpu.memory_space<vmem>>) attributes {dimension_semantics = [#tpu.dimension_semantics<parallel>], iteration_bounds = array<i64: 2>, scalar_prefetch = 0 : i64, scratch_operands = 0 : i64, tpu.core_type = #tpu.core_type<tc>, window_params = [{transform_indices = @transform_0, window_bounds = array<i64: 4, 16, 128>}, {pipeline_mode = #tpu.pipeline_mode<synchronous>, transform_indices = @transform_1, window_bounds = array<i64: 384, 128>}, {pipeline_mode = #tpu.pipeline_mode<synchronous>, transform_indices = @transform_2, window_bounds = array<i64: 1, 128>}, {pipeline_mode = #tpu.pipeline_mode<synchronous>, transform_indices = @transform_3, window_bounds = array<i64: 384, 128>}, {pipeline_mode = #tpu.pipeline_mode<synchronous>, transform_indices = @transform_4, window_bounds = array<i64: 1, 128>}, {transform_indices = @transform_5, window_bounds = array<i64: 4, 16, 128>}]} {
    %c0 = arith.constant 0 : index
    %c0_0 = arith.constant 0 : index
    %c0_1 = arith.constant 0 : index
    %0 = vector.load %arg1[%c0, %c0_0, %c0_1] : memref<4x16x128xf32, #tpu.memory_space<vmem>>, vector<4x16x128xf32>
    %1 = vector.shape_cast %0 : vector<4x16x128xf32> to vector<64x128xf32>
    %2 = tpu.iota {dimensions = array<i32: 0>} : vector<64x128xi32>
    %c16_i32 = arith.constant 16 : i32
    %c0_i32 = arith.constant 0 : i32
    %3 = arith.cmpi eq, %c16_i32, %c0_i32 : i32
    %c1_i32 = arith.constant 1 : i32
    %4 = arith.select %3, %c1_i32, %c16_i32 : i32
    %5 = vector.broadcast %4 : i32 to vector<64x128xi32>
    %6 = arith.remsi %2, %5 : vector<64x128xi32>
    %c0_i32_2 = arith.constant 0 : i32
    %7 = vector.broadcast %c0_i32_2 : i32 to vector<64x128xi32>
    %8 = arith.cmpi ne, %6, %7 : vector<64x128xi32>
    %c0_i32_3 = arith.constant 0 : i32
    %9 = vector.broadcast %c0_i32_3 : i32 to vector<64x128xi32>
    %10 = arith.cmpi slt, %6, %9 : vector<64x128xi32>
    %c0_i32_4 = arith.constant 0 : i32
    %11 = arith.cmpi slt, %4, %c0_i32_4 : i32
    %12 = vector.broadcast %11 : i1 to vector<64x128xi1>
    %13 = vector.broadcast %12 : vector<64x128xi1> to vector<64x128xi1>
    %14 = arith.xori %10, %13 : vector<64x128xi1>
    %15 = arith.andi %14, %8 : vector<64x128xi1>
    %16 = vector.broadcast %4 : i32 to vector<64x128xi32>
    %17 = arith.addi %6, %16 : vector<64x128xi32>
    %18 = arith.select %15, %17, %6 : vector<64x128xi1>, vector<64x128xi32>
    %c0_i32_5 = arith.constant 0 : i32
    %19 = vector.broadcast %c0_i32_5 : i32 to vector<64x128xi32>
    %20 = arith.cmpi ne, %18, %19 : vector<64x128xi32>
    %c15_i32 = arith.constant 15 : i32
    %21 = vector.broadcast %c15_i32 : i32 to vector<64x128xi32>
    %22 = arith.cmpi ne, %18, %21 : vector<64x128xi32>
    %c1_i32_6 = arith.constant 1 : i32
    %23 = tpu.dynamic_rotate %1 by %c1_i32_6 dim 0 : vector<64x128xf32>, i32 -> vector<64x128xf32>
    %cst = arith.constant 0.000000e+00 : f32
    %24 = vector.broadcast %cst : f32 to vector<64x128xf32>
    %25 = arith.select %20, %23, %24 : vector<64x128xi1>, vector<64x128xf32>
    %c63_i32 = arith.constant 63 : i32
    %26 = tpu.dynamic_rotate %1 by %c63_i32 dim 0 : vector<64x128xf32>, i32 -> vector<64x128xf32>
    %cst_7 = arith.constant 0.000000e+00 : f32
    %27 = vector.broadcast %cst_7 : f32 to vector<64x128xf32>
    %28 = arith.select %22, %26, %27 : vector<64x128xi1>, vector<64x128xf32>
    %29 = tpu.concatenate %25, %1, %28 in 1 : vector<64x128xf32>, vector<64x128xf32>, vector<64x128xf32> -> vector<64x384xf32>
    %30 = arith.truncf %29 : vector<64x384xf32> to vector<64x384xbf16>
    %c0_8 = arith.constant 0 : index
    %c0_9 = arith.constant 0 : index
    %31 = vector.load %arg2[%c0_8, %c0_9] : memref<384x128xbf16, #tpu.memory_space<vmem>>, vector<384x128xbf16>
    %cst_10 = arith.constant dense<0.000000e+00> : vector<64x128xf32>
    %32 = tpu.matmul %30, %31, %cst_10 {dimension_numbers = #tpu.dot_dimension_numbers<[1], [0], [0], [1], [0, 0, 1, 1], [], []>} : vector<64x384xbf16>, vector<384x128xbf16>, vector<64x128xf32> -> vector<64x128xf32>
    %c0_11 = arith.constant 0 : index
    %c0_12 = arith.constant 0 : index
    %33 = vector.load %arg3[%c0_11, %c0_12] : memref<1x128xf32, #tpu.memory_space<vmem>>, vector<1x128xf32>
    %34 = vector.broadcast %33 : vector<1x128xf32> to vector<64x128xf32>
    %35 = arith.addf %32, %34 : vector<64x128xf32>
    %cst_13 = arith.constant 0.000000e+00 : f32
    %36 = vector.broadcast %cst_13 : f32 to vector<64x128xf32>
    %37 = arith.maximumf %35, %36 : vector<64x128xf32>
    %c1_i32_14 = arith.constant 1 : i32
    %38 = tpu.dynamic_rotate %37 by %c1_i32_14 dim 0 : vector<64x128xf32>, i32 -> vector<64x128xf32>
    %cst_15 = arith.constant 0.000000e+00 : f32
    %39 = vector.broadcast %cst_15 : f32 to vector<64x128xf32>
    %40 = arith.select %20, %38, %39 : vector<64x128xi1>, vector<64x128xf32>
    %c63_i32_16 = arith.constant 63 : i32
    %41 = tpu.dynamic_rotate %37 by %c63_i32_16 dim 0 : vector<64x128xf32>, i32 -> vector<64x128xf32>
    %cst_17 = arith.constant 0.000000e+00 : f32
    %42 = vector.broadcast %cst_17 : f32 to vector<64x128xf32>
    %43 = arith.select %22, %41, %42 : vector<64x128xi1>, vector<64x128xf32>
    %44 = tpu.concatenate %40, %37, %43 in 1 : vector<64x128xf32>, vector<64x128xf32>, vector<64x128xf32> -> vector<64x384xf32>
    %45 = arith.truncf %44 : vector<64x384xf32> to vector<64x384xbf16>
    %c0_18 = arith.constant 0 : index
    %c0_19 = arith.constant 0 : index
    %46 = vector.load %arg4[%c0_18, %c0_19] : memref<384x128xbf16, #tpu.memory_space<vmem>>, vector<384x128xbf16>
    %cst_20 = arith.constant dense<0.000000e+00> : vector<64x128xf32>
    %47 = tpu.matmul %45, %46, %cst_20 {dimension_numbers = #tpu.dot_dimension_numbers<[1], [0], [0], [1], [0, 0, 1, 1], [], []>} : vector<64x384xbf16>, vector<384x128xbf16>, vector<64x128xf32> -> vector<64x128xf32>
    %c0_21 = arith.constant 0 : index
    %c0_22 = arith.constant 0 : index
    %48 = vector.load %arg5[%c0_21, %c0_22] : memref<1x128xf32, #tpu.memory_space<vmem>>, vector<1x128xf32>
    %49 = vector.broadcast %48 : vector<1x128xf32> to vector<64x128xf32>
    %50 = arith.addf %47, %49 : vector<64x128xf32>
    %51 = arith.addf %50, %1 : vector<64x128xf32>
    %cst_23 = arith.constant 0.000000e+00 : f32
    %52 = vector.broadcast %cst_23 : f32 to vector<64x128xf32>
    %53 = arith.maximumf %51, %52 : vector<64x128xf32>
    %54 = vector.shape_cast %53 : vector<64x128xf32> to vector<4x16x128xf32>
    %c0_24 = arith.constant 0 : index
    %c0_25 = arith.constant 0 : index
    %c0_26 = arith.constant 0 : index
    %55 = vector.load %arg6[%c0_24, %c0_25, %c0_26] : memref<4x16x128xf32, #tpu.memory_space<vmem>>, vector<4x16x128xf32>
    tpu.vector_store %arg6[%c0_24, %c0_25, %c0_26], %54 {strides = array<i32>} : memref<4x16x128xf32, #tpu.memory_space<vmem>>, vector<4x16x128xf32>,
    return
  }
  func.func @transform_0(%arg0: i32) -> (i32, i32, i32) {
    %c0_i32 = arith.constant 0 : i32
    %c0_i32_0 = arith.constant 0 : i32
    %c0_i32_1 = arith.constant 0 : i32
    return %arg0, %c0_i32, %c0_i32_0 : i32, i32, i32
  }
  func.func @transform_1(%arg0: i32) -> (i32, i32) {
    %c0_i32 = arith.constant 0 : i32
    %c0_i32_0 = arith.constant 0 : i32
    %c0_i32_1 = arith.constant 0 : i32
    return %c0_i32, %c0_i32_0 : i32, i32
  }
  func.func @transform_2(%arg0: i32) -> (i32, i32) {
    %c0_i32 = arith.constant 0 : i32
    %c0_i32_0 = arith.constant 0 : i32
    %c0_i32_1 = arith.constant 0 : i32
    return %c0_i32, %c0_i32_0 : i32, i32
  }
  func.func @transform_3(%arg0: i32) -> (i32, i32) {
    %c0_i32 = arith.constant 0 : i32
    %c0_i32_0 = arith.constant 0 : i32
    %c0_i32_1 = arith.constant 0 : i32
    return %c0_i32, %c0_i32_0 : i32, i32
  }
  func.func @transform_4(%arg0: i32) -> (i32, i32) {
    %c0_i32 = arith.constant 0 : i32
    %c0_i32_0 = arith.constant 0 : i32
    %c0_i32_1 = arith.constant 0 : i32
    return %c0_i32, %c0_i32_0 : i32, i32
  }
  func.func @transform_5(%arg0: i32) -> (i32, i32, i32) {
    %c0_i32 = arith.constant 0 : i32
    %c0_i32_0 = arith.constant 0 : i32
    %c0_i32_1 = arith.constant 0 : i32
    return %arg0, %c0_i32, %c0_i32_0 : i32, i32, i32
  }
}

</mosaic_0001>

<bundles_post_ra>
// kernel: tpu_custom_call.1
= control target key start
LH: loop header
LB: loop body
LE: loop exit
PB: predicated region body
PF: predicated region fallthrough
CT: control target
= control target key end

     0   :  { %10 = vsyncpa [#allocation3], 0  ;;  %s2472_s0 = inlined_call_operand.hbm [shape: f32[8,16,128], index: 0, kind: input, shape index: {}]   ;;  %s2473_s1 = inlined_call_operand.hbm [shape: bf16[384,128], index: 1, kind: input, shape index: {}]   ;;  %s2474_s2 = inlined_call_operand.vmem [shape: f32[1,128], index: 2, kind: input, shape index: {}]   ;;  %s2475_s3 = inlined_call_operand.hbm [shape: bf16[384,128], index: 3, kind: input, shape index: {}]   ;;  %s2476_s4 = inlined_call_operand.vmem [shape: f32[1,128], index: 4, kind: input, shape index: {}]   ;;  %s2477_s5 = inlined_call_operand.hbm [shape: f32[8,16,128], index: 5, kind: output, shape index: {}]  }
   0x1   :  { %12 = vsyncpa [#allocation3 + $0x1], 0 }
   0x2   :  { %13 = vsyncpa [#allocation6], 0 }
   0x3   :  { %14 = vsyncpa [#allocation4], 0 }
   0x4   :  { %16 = vsyncpa [#allocation4 + $0x1], 0  ;;  %s1919_s18 = smov 0   ;;  %s1921_s19 = smov 0  }
   0x5   :  { %s1923_s20 = smov 0   ;;  %s1925_s21 = smov 0  }
   0x6 LB: > { %s1940_s22 = sadd.s32 4294967295, %s1876_s21   ;;  %s1324_s23 = sadd.s32 4294967294, %s1876_s21   ;;  %s1876_s21 = sphi %s1925_s21, %s2527_s21   ;;  %s1872_s20 = sphi %s1923_s20, %s2526_s20   ;;  %s1868_s19 = sphi %s1921_s19, %s2525_s19   ;;  %s1864_s18 = sphi %s1919_s18, %s2524_s18  }
   0x7   : > { %p42_p0 = scmp.ne.s32.totalorder %s1868_s19, %s1864_s18  ;;  %p2478_p1 = scmp.eq.s32.totalorder %s1940_s22, 0 }
   0x8   : > { %p156_p3 = scmp.eq.s32.totalorder %s1324_s23, 1  ;;  %p1325_p5 = scmp.ge.s32.totalorder %s1876_s21, 1 }
   0x9   : > { %p1949_p4 = por %p2478_p1, %p42_p0  ;;  %p163_p7 = scmp.lt.s32.totalorder %s1876_s21, 3 }
   0xa   : > { %p1954_p6 = por %p156_p3, %p42_p0  ;;  %s1878_s27 = smov [#allocation5]  }
   0xb   : > { %s2481_s24 = scalar_select %p1949_p4, 1, 0 }
   0xc   : > { %s2482_s25 = scalar_select %p1954_p6, 1, 0 }
   0xd   : > { %p1959_p8 = pnand %p1325_p5, %p163_p7  ;;  %s175_s28 = sshll.u32 %s1878_s27, 4  ;;  %s1963_s28 = int_to_ptr.vmem [resolvable:$true] %s175_s28 }
   0xe   : > { %s1879_s30 = smov [#allocation7]   ;;  %s1720_s9 = scalar_lea.hbm %s2473_s1, 3072 }
   0xf   : > { %p1610_p9 = pneg %p1959_p8  ;;  %s191_s6 = sshll.u32 %s1879_s30, 4  ;;  %s1974_s6 = int_to_ptr.vmem [resolvable:$true] %s191_s6 }
  0x10   : > { %p1721_p12 = scmp.ne.s32.totalorder %s2473_s1, %s1720_s9  ;;  %p1727_p5 = scmp.lt.u32.totalorder %s1720_s9, %s2473_s1 }
  0x11   : > { %p1970_p11 = pnand %p1610_p9, %p2478_p1 }
  0x13   : > { %p1722_p13 = pneg %p1970_p11 }
  0x15   : > { %p1723_p0 = pnand %p1722_p13, %p1721_p12 }
  0x17   : > { %p1724_p3 = pneg %p1723_p0 }
  0x19   : > { %p1729_p7 = pnand %p1727_p5, %p1724_p3 }
  0x1b   : > { %1732 = shalt.err (!%p1729_p7)
}
  0x1c   : > { %s1733_s14 = scalar_lea.vmem %s1963_s28, 3072  ;;  %p1741_p2 = scmp.lt.s32.totalorder %s1963_s28, %s1963_s28 }
  0x1d   : > { %p1734_p9 = scmp.ne.s32.totalorder %s1963_s28, %s1733_s14  ;;  %p1742_p12 = scmp.lt.s32.totalorder %s1733_s14, %s1733_s14 }
  0x1f   : > { %p1736_p10 = pnand %p1734_p9, %p1722_p13  ;;  %p1743_p0 = por %p1742_p12, %p1741_p2 }
  0x21   : > { %p1737_p1 = pneg %p1736_p10 }
  0x23   : > { %p1744_p6 = pnand %p1743_p0, %p1737_p1 }
  0x25   : > { %1747 = shalt.err (!%p1744_p6)
}
  0x26   : > { %s1880_s15 = smov 64   ;;  %s1881_s16 = smov 4  }
  0x27   : > { %1613 = dma.hbm_to_vmem [thread:$0]  (!%p1970_p11), %s2473_s1, 3072, %s1963_s28, [#allocation6], %s1880_s15, %s1880_s15, %s1881_s16  }
  0x28   : > { %s1748_s7 = scalar_lea.hbm %s2475_s3, 3072 }
  0x29   : > { %p1749_p2 = scmp.ne.s32.totalorder %s2475_s3, %s1748_s7  ;;  %p1755_p10 = scmp.lt.u32.totalorder %s1748_s7, %s2475_s3 }
  0x2b   : > { %p1751_p1 = pnand %p1749_p2, %p1722_p13 }
  0x2d   : > { %p1752_p6 = pneg %p1751_p1 }
  0x2f   : > { %p1757_p3 = pnand %p1755_p10, %p1752_p6 }
  0x31   : > { %1760 = shalt.err (!%p1757_p3)
}
  0x32   : > { %s1761_s28 = scalar_lea.vmem %s1974_s6, 3072  ;;  %p1769_p12 = scmp.lt.s32.totalorder %s1974_s6, %s1974_s6 }
  0x33   : > { %p1762_p5 = scmp.ne.s32.totalorder %s1974_s6, %s1761_s28  ;;  %p1770_p0 = scmp.lt.s32.totalorder %s1761_s28, %s1761_s28 }
  0x35   : > { %p1764_p7 = pnand %p1762_p5, %p1722_p13  ;;  %p1771_p2 = por %p1770_p0, %p1769_p12 }
  0x37   : > { %p1765_p9 = pneg %p1764_p7 }
  0x39   : > { %p1772_p1 = pnand %p1771_p2, %p1765_p9 }
  0x3b   : > { %1775 = shalt.err (!%p1772_p1)
}
  0x3c   : > { %1616 = dma.hbm_to_vmem [thread:$0]  (!%p1970_p11), %s2475_s3, 3072, %s1974_s6, [#allocation6], %s1880_s15, %s1880_s15, %s1881_s16  }
  0x3d   : > { %s2029_s14 = sadd.s32 1, %s1876_s21   ;;  %s29_s29 = sadd.s32 1, %s1872_s20 }
  0x3e   : > { %s26_s17 = ssub.s32 %s1876_s21, %s2029_s14  ;;  %p36_p13 = scmp.ne.s32.totalorder %s1872_s20, %s1868_s19 }
  0x3f   : > { %p27_p6 = scmp.eq.s32.totalorder %s26_s17, 0  ;;  %p37_p10 = scmp.eq.s32.totalorder %s1876_s21, 0 }
  0x40   : > { %p2485_p3 = scmp.eq.s32.totalorder %s1940_s22, 1  ;;  %p1627_p7 = scmp.lt.s32.totalorder %s1876_s21, 2 }
  0x41   : > { %s2045_s27 = scalar_select %p27_p6, %s1872_s20, %s29_s29  }
  0x42   : > { %p2039_p5 = por %p2485_p3, %p36_p13  ;;  %p38_p9 = por %p37_p10, %p36_p13 }
  0x43   : > { %s208_s30 = sand.u32 1, %s1872_s20   ;;  %s1443_s6 = sshll.u32 %s1876_s21, 10 }
  0x44   : > { %s2486_s23 = scalar_select %p2039_p5, 1, 0 }
  0x45   : > { %s1329_s7 = sshll.u32 %s208_s30, 6  ;;  %s2052_s8 = scalar_lea.hbm %s2472_s0, %s1443_s6 }
  0x46   : > { %s212_s9 = scalar_lea.vmem [#allocation2], %s1329_s7  ;;  %p2056_p11 = pnand %p1627_p7, %p38_p9 }
  0x47   : > { %s220_s10 = sshll.u32 %s212_s9, 4  ;;  %s2060_s28 = scalar_lea.sflag [#allocation3], %s208_s30  ;;  %s2054_s10 = int_to_ptr.vmem [resolvable:$true] %s220_s10 }
  0x48   : > { %s1776_s12 = scalar_lea.hbm %s2052_s8, 1024  ;;  %p1778_p0 = pneg %p2056_p11 }
  0x49   : > { %p1777_p12 = scmp.ne.s32.totalorder %s2052_s8, %s1776_s12  ;;  %s1781_s17 = scalar_lea.hbm %s2472_s0, 2048 }
  0x4a   : > { %p1782_p13 = scmp.lt.u32.totalorder %s2052_s8, %s2472_s0  ;;  %p1783_p6 = scmp.lt.u32.totalorder %s1781_s17, %s1776_s12 }
  0x4b   : > { %p1779_p2 = pnand %p1778_p0, %p1777_p12  ;;  %p1785_p3 = scmp.lt.u32.totalorder %s1776_s12, %s2052_s8 }
  0x4c   : > { %p1784_p10 = por %p1783_p6, %p1782_p13 }
  0x4d   : > { %p1780_p1 = pneg %p1779_p2 }
  0x4e   : > { %p1786_p7 = por %p1785_p3, %p1784_p10 }
  0x50   : > { %p1787_p9 = pnand %p1786_p7, %p1780_p1 }
  0x52   : > { %1790 = shalt.err (!%p1787_p9)
}
  0x53   : > { %s1791_s30 = scalar_lea.vmem %s2054_s10, 1024  ;;  %s1882_s15 = smov [#allocation2]  }
  0x54   : > { %p1792_p12 = scmp.ne.s32.totalorder %s2054_s10, %s1791_s30  ;;  %s1796_s16 = sshll.u32 %s1882_s15, 4  ;;  %s1797_s16 = int_to_ptr.vmem [resolvable:$false] %s1796_s16 }
  0x55   : > { %s1798_s9 = scalar_lea.vmem %s1797_s16, 2048  ;;  %p1799_p4 = scmp.lt.s32.totalorder %s2054_s10, %s1797_s16 }
  0x56   : > { %p1794_p2 = pnand %p1792_p12, %p1778_p0  ;;  %p1800_p13 = scmp.lt.s32.totalorder %s1798_s9, %s1791_s30 }
  0x58   : > { %p1795_p5 = pneg %p1794_p2  ;;  %p1801_p6 = por %p1800_p13, %p1799_p4 }
  0x5a   : > { %p1802_p10 = pnand %p1801_p6, %p1795_p5 }
  0x5c   : > { %1805 = shalt.err (!%p1802_p10)
}
  0x5d   : > { %s1883_s12 = smov 128   ;;  %s1884_s13 = smov 8  }
  0x5e   : > { %1620 = dma.hbm_to_vmem [thread:$0]  (!%p2056_p11), %s2052_s8, 1024, %s2054_s10, %s2060_s28, %s1883_s12, %s1883_s12, %s1884_s13  }
  0x5f   : > { %232 = sbr.rel (%p1959_p8) target bundleno = 656 (0x290), region = 40  ;;  %s2091_s29 = sand.u32 (!%p1959_p8), 1, %s1868_s19  }
  0x60   : > { %s1334_s17 = sshll.u32 (!%p1959_p8), %s2091_s29, 6  ;;  %s235_s7 = scalar_lea.sflag (!%p1959_p8), [#allocation3], %s2091_s29 }
  0x61   : > { %s2097_s6 = scalar_lea.vmem (!%p1959_p8), [#allocation2], %s1334_s17  ;;  %p2488_p4 = scmp.ne.s32.totalorder (!%p1959_p8), %s2481_s24, 0 }
  0x66   : > { %1851 = dma.done.wait (%p2488_p4), %s235_s7, 1024  }
  0x67   : > { %1853 = vsyncadd (%p2488_p4), %s235_s7, 4294966272  ;;  %p2489_p5 = scmp.eq.s32.totalorder %s1940_s22, 0 }
  0x69   : > { %1855 = dma.done.wait (%p2489_p5), [#allocation6], 6144   ;;  %p2490_p8 = pmov %p2489_p5 }
  0x6a   : > { %v1672_v0 = vld [vmem:[#allocation5 + $0x40] sm:$0xff]   ;;  %v1674_v2 = vld [vmem:[#allocation5 + $0x48] sm:$0xff]   ;;  %v284_v5 = vlaneseq  ;;  %v1677_v6 = vld [vmem:[#allocation5 + $0x50] sm:$0xff]   ;;  %vm1885_vm6 = vmmov 1   ;;  %s2405_s11 = scalar_lea.vmem [#allocation8], %s1334_s17  ;;  %s1445_s28 = sshll.u32 %s1940_s22, 10 }
  0x6b   : > { %1857 = vsyncadd (%p2490_p8), [#allocation6], 4294961152  ;;  %v1673_v1 = vld [vmem:[#allocation5] sm:$0xff]   ;;  %1446 = vmatprep.subr.bf16.mxu0 %v1672_v0  ;;  %v1676_v4 = vld [vmem:[#allocation5 + $0x8] sm:$0xff]   ;;  %s1232_s30 = sshll.u32 %s2405_s11, 4  ;;  %s2424_s9 = scalar_lea.hbm %s2477_s5, %s1445_s28  ;;  %s2426_s30 = int_to_ptr.vmem [resolvable:$true] %s1232_s30 }
  0x6c   : > { %1447 = vmatpush3.bf16.msra.mxu0 %v1673_v1  ;;  %v1675_v3 = vld [vmem:[#allocation5 + $0x80] sm:$0xff]   ;;  %v1678_v7 = vld [vmem:[#allocation5 + $0x88] sm:$0xff]   ;;  %v1679_v8 = vld [vmem:[#allocation5 + $0x10] sm:$0xff]   ;;  %v2107_v10 = vshrl.u32 %v284_v5, 7  ;;  %s1218_s12 = scalar_lea.sflag [#allocation4], %s2091_s29  ;;  %s1806_s13 = scalar_lea.vmem %s2426_s30, 1024 }
  0x6d   : > { %1448 = vmatprep.subr.bf16.mxu0 %v1674_v2  ;;  %1550 = vmatprep.subr.bf16.mxu1 %v1675_v3  ;;  %v1680_v9 = vld [vmem:[#allocation5 + $0x58] sm:$0xff]   ;;  %v1681_v11 = vld [vmem:[#allocation5 + $0x90] sm:$0xff]   ;;  %v1683_v13 = vld [vmem:[#allocation5 + $0x60] sm:$0xff]   ;;  %p1807_p11 = scmp.ne.s32.totalorder %s2426_s30, %s1806_s13  ;;  %p2521_p0 = scmp.ne.s32.totalorder %s2486_s23, 0 }
  0x6e   : > { %1551 = vmatpush3.bf16.msra.mxu1 %v1675_v3  ;;  %v1682_v12 = vld [vmem:[#allocation5 + $0x18] sm:$0xff]   ;;  %v297_v15 = vand.u32 15, %v2107_v10  ;;  %v286_v16 = vadd.s32 8, %v2107_v10  ;;  %v288_v17 = vadd.s32 24, %v2107_v10  ;;  %v1685_v18 = vld [vmem:[#allocation5 + $0x20] sm:$0xff]   ;;  %v287_v19 = vadd.s32 16, %v2107_v10 }
  0x6f   : > { %1552 = vmatprep.subr.bf16.mxu1 %v1678_v7  ;;  %v1684_v14 = vld [vmem:[#allocation5 + $0x98] sm:$0xff]   ;;  %v1687_v20 = vld [vmem:[#allocation5 + $0xa0] sm:$0xff]   ;;  %vm413_vm0 = vcmp.lt.s32.totalorder %v2107_v10, 1  ;;  %v2115_v21 = vadd.s32 32, %v2107_v10  ;;  %v1686_v22 = vld [vmem:[#allocation5 + $0x68] sm:$0xff]   ;;  %vm438_vm1 = vcmp.lt.s32.totalorder %v2107_v10, 7  ;;  %p1808_p1 = pnand %p1807_p11, %p2521_p0 }
  0x70   : > { %1449 = vmatpush3.bf16.msra.mxu0 %v1676_v4  ;;  %v290_v23 = vadd.s32 40, %v2107_v10  ;;  %vm2119_vm2 = vcmp.ne.s32.totalorder %v297_v15, 0  ;;  %v304_v25 = vand.u32 15, %v286_v16  ;;  %v1688_v26 = vld [vmem:[#allocation5 + $0x28] sm:$0xff]   ;;  %v292_v27 = vadd.s32 56, %v2107_v10  ;;  %v1689_v30 = vld [vmem:[#allocation5 + $0x70] sm:$0xff]  }
  0x71   : > { %1450 = vmatprep.subr.bf16.mxu0 %v1677_v6  ;;  %v1690_v28 = vld [vmem:[#allocation5 + $0xa8] sm:$0xff]   ;;  %v318_v29 = vand.u32 15, %v288_v17  ;;  %v2125_v31 = vadd.s32 48, %v2107_v10  ;;  %v1691_v32 = vld [vmem:[#allocation5 + $0x30] sm:$0xff]   ;;  %v311_v35 = vand.u32 15, %v287_v19  ;;  %v2132_v36 = vld [vmem:[%s2097_s6] sm:$0xff]  ;;  %p1809_p3 = pneg %p1808_p1 }
  0x72   : > { %1553 = vmatpush3.bf16.msra.mxu1 %v1678_v7  ;;  %vm2127_vm3 = vcmp.ne.s32.totalorder %v304_v25, 15  ;;  %v1693_v34 = vld [vmem:[#allocation5 + $0xb0] sm:$0xff]   ;;  %v2135_v37 = vld [vmem:[%s2097_s6 + $0x8] sm:$0xff]  ;;  %v2138_v38 = vld [vmem:[%s2097_s6 + $0x38] sm:$0xff]  ;;  %v332_v40 = vand.u32 15, %v290_v23  ;;  %v346_v41 = vand.u32 15, %v292_v27 }
  0x73   : > { %1554 = vmatprep.subr.bf16.mxu1 %v1681_v11  ;;  %vm2140_vm4 = vcmp.ne.s32.totalorder %v318_v29, 15  ;;  %v1692_v42 = vld [vmem:[#allocation5 + $0x78] sm:$0xff]   ;;  %v405_v43 = vrot.slane %v2132_v36, 7  ;;  %v406_v44 = vrot.slane %v2135_v37, 7  ;;  %v456_v45 = vpack.c.bf16 %v2135_v37, %v2132_v36  ;;  %v2150_v47 = vld [vmem:[%s2097_s6 + $0x10] sm:$0xff]  ;;  %v2166_v55 = vld [vmem:[%s2097_s6 + $0x20] sm:$0xff] }
  0x74   : > { %1451 = vmatpush3.bf16.msra.mxu0 %v1679_v8  ;;  %v412_v46 = vrot.slane %v2138_v38, 7  ;;  %v430_v48 = vrot.slane %v2132_v36, 1  ;;  %v431_v49 = vrot.slane %v2135_v37, 1  ;;  %v325_v50 = vand.u32 15, %v2115_v21  ;;  %v2163_v54 = vld [vmem:[%s2097_s6 + $0x18] sm:$0xff]  ;;  %vm2175_vm7 = vmpackc.low %vm1885_vm6, %vm2119_vm2  ;;  %v2192_v1 = vld [vmem:[%s2097_s6 + $0x30] sm:$0xff] }
  0x75   : > { %1452 = vmatprep.subr.bf16.mxu0 %v1680_v9  ;;  %698 = vmatprep.mubr.bf16.mxu0 %v456_v45  ;;  %v420_v51 = vsel %vm413_vm0, %v405_v43, %v406_v44  ;;  %v432_v53 = vrot.slane %v2150_v47, 1  ;;  %vm2168_vm5 = vcmp.ne.s32.totalorder %v311_v35, 0  ;;  %v1694_v57 = vld [vmem:[#allocation5 + $0x38] sm:$0xff]   ;;  %v433_v61 = vrot.slane %v2163_v54, 1  ;;  %vm2201_vm10 = vmpackc.low %vm2127_vm3, %vm1885_vm6  ;;  %v2207_v7 = vld [vmem:[%s2097_s6 + $0x28] sm:$0xff]  ;;  %s1886_s22 = smov [#allocation8]  }
  0x76   : > { %1555 = vmatpush3.bf16.msra.mxu1 %v1681_v11  ;;  %v421_v52 = vsel %vm413_vm0, %v412_v46, %v405_v43  ;;  %v1695_v59 = vld [vmem:[#allocation5 + $0xb8] sm:$0xff]   ;;  %v445_v60 = vsel %vm438_vm1, %v430_v48, %v431_v49  ;;  %v434_v62 = vrot.slane %v2166_v55, 1  ;;  %vm2185_vm8 = vcmp.ne.s32.totalorder %v332_v40, 15  ;;  %vm2217_vm11 = vmpackc.low %vm2140_vm4, %vm1885_vm6  ;;  %v1707_v63 = vld [vmem:[#allocation7 + $0xa8] sm:$0xff]   ;;  %s1810_s17 = sshll.u32 %s1886_s22, 4  ;;  %s1811_s17 = int_to_ptr.vmem [resolvable:$false] %s1810_s17 }
  0x77   : > { %1556 = vmatprep.subr.bf16.mxu1 %v1684_v14  ;;  %v444_v0 = vsel %vm438_vm1, %v431_v49, %v432_v53  ;;  %vm2194_vm9 = vcmp.ne.s32.totalorder %v346_v41, 15  ;;  %v1364_v3 = vpack.c.bf16 %v420_v51, %v421_v52  ;;  %v407_v6 = vrot.slane %v2150_v47, 7  ;;  %vm2228_vm12 = vmpackc.low %vm1885_vm6, %vm2168_vm5  ;;  %v1698_v52 = vld [vmem:[#allocation7 + $0x90] sm:$0xff]   ;;  %v1701_v56 = vld [vmem:[#allocation7 + $0x98] sm:$0xff]   ;;  %s1812_s7 = scalar_lea.vmem %s1811_s17, 2048  ;;  %p1813_p7 = scmp.lt.s32.totalorder %s2426_s30, %s1811_s17 }
  0x78   : > { %1453 = vmatpush3.bf16.msra.mxu0 %v1682_v12  ;;  %v1376_v5 = vpack.c.bf16 %v444_v0, %v445_v60  ;;  %v437_v8 = vrot.slane %v2138_v38, 1  ;;  %v442_v9 = vsel %vm438_vm1, %v433_v61, %v434_v62  ;;  %v443_v11 = vsel %vm438_vm1, %v432_v53, %v433_v61  ;;  %vm2242_vm13 = vmpackc.low %vm2185_vm8, %vm1885_vm6  ;;  %v1699_v53 = vld [vmem:[#allocation7 + $0x40] sm:$0xff]   ;;  %v1705_v61 = vld [vmem:[#allocation7 + $0x50] sm:$0xff]   ;;  %p1814_p9 = scmp.lt.s32.totalorder %s1812_s7, %s1806_s13 }
  0x79   : > { %1454 = vmatprep.subr.bf16.mxu0 %v1683_v13  ;;  %v408_v13 = vrot.slane %v2163_v54, 7  ;;  %v459_v15 = vpack.c.bf16 %v2163_v54, %v2150_v47  ;;  %v436_v17 = vrot.slane %v2192_v1, 1  ;;  %v410_v19 = vrot.slane %v2207_v7, 7  ;;  %vm2253_vm14 = vmpackc.low %vm2194_vm9, %vm1885_vm6  ;;  %v1704_v60 = vld [vmem:[#allocation7 + $0xa0] sm:$0xff]   ;;  %v1708_v0 = vld [vmem:[#allocation7 + $0x58] sm:$0xff]  }
  0x7a   : > { %1557 = vmatpush3.bf16.msra.mxu1 %v1684_v14  ;;  %v435_v14 = vrot.slane %v2207_v7, 1  ;;  %1566 = vmatprep.mubr.msk.bf16.mxu1 %vm2201_vm10, %v1376_v5  ;;  %v1379_v23 = vpack.c.bf16 %v442_v9, %v443_v11  ;;  %vm2261_vm15 = vcmp.ne.s32.totalorder %v325_v50, 0  ;;  %v446_v33 = vsel %vm438_vm1, %v437_v8, %v430_v48  ;;  %v1709_v2 = vld [vmem:[#allocation7 + $0x18] sm:$0xff]   ;;  %v1711_v5 = vld [vmem:[#allocation7 + $0x60] sm:$0xff]   ;;  %v1714_v9 = vld [vmem:[#allocation7 + $0x68] sm:$0xff]   ;;  %p1815_p12 = por %p1814_p9, %p1813_p7 }
  0x7b   : > { %1558 = vmatprep.subr.bf16.mxu1 %v1687_v20  ;;  %v418_v27 = vsel %vm413_vm0, %v407_v6, %v408_v13  ;;  %vm2288_vm2 = vmpackc.low %vm1885_vm6, %vm2261_vm15  ;;  %v465_v43 = vpack.c.bf16 %v2138_v38, %v2192_v1  ;;  %v339_v45 = vand.u32 15, %v2125_v31  ;;  %v1697_v31 = vld [vmem:[#allocation7 + $0x88] sm:$0xff]  }
  0x7c   : > { %1455 = vmatpush3.bf16.msra.mxu0 %v1685_v18  ;;  %v1696_v18 = vld [vmem:[#allocation7 + $0x80] sm:$0xff]   ;;  %v441_v21 = vsel %vm438_vm1, %v434_v62, %v435_v14  ;;  %v440_v24 = vsel %vm438_vm1, %v435_v14, %v436_v17  ;;  %v1706_v62 = vld [vmem:[#allocation7 + $0x10] sm:$0xff]   ;;  %v1715_v11 = vld [vmem:[#allocation7 + $0x28] sm:$0xff]   ;;  %p1816_p2 = pnand %p1815_p12, %p1809_p3 }
  0x7d   : > { %1456 = vmatprep.subr.bf16.mxu0 %v1686_v22  ;;  %v1382_v25 = vpack.c.bf16 %v440_v24, %v441_v21  ;;  %vm395_vm3 = vcmp.ne.s32.totalorder %v339_v45, 0  ;;  %v1717_v14 = vld [vmem:[#allocation7 + $0x30] sm:$0xff]  }
  0x7e   : > { %1559 = vmatpush3.bf16.msra.mxu1 %v1687_v20  ;;  %v409_v20 = vrot.slane %v2166_v55, 7  ;;  %vm2305_vm4 = vmpackc.low %vm1885_vm6, %vm395_vm3 }
  0x7f   : > { %1560 = vmatprep.subr.bf16.mxu1 %v1690_v28 }
  0x80   : > { %1457 = vmatpush3.bf16.msra.mxu0 %v1688_v26  ;;  %v416_v39 = vsel %vm413_vm0, %v409_v20, %v410_v19  ;;  %v417_v40 = vsel %vm413_vm0, %v408_v13, %v409_v20  ;;  %v1716_v13 = vld [vmem:[#allocation7 + $0x70] sm:$0xff]   ;;  %v2314_v20 = vld [vmem:[%s2474_s2] ss:$0 sm:$0xff] }
  0x81   : > { %1458 = vmatprep.subr.bf16.mxu0 %v1689_v30  ;;  %v1370_v41 = vpack.c.bf16 %v416_v39, %v417_v40  ;;  %v1387_v26 = vld [vmem:[%s2476_s4] ss:$0 sm:$0xff] }
  0x82   : > { %1561 = vmatpush3.bf16.msra.mxu1 %v1690_v28  ;;  %v419_v28 = vsel %vm413_vm0, %v406_v44, %v407_v6  ;;  %v411_v44 = vrot.slane %v2192_v1, 7  ;;  %v1712_v6 = vld [vmem:[#allocation7 + $0x20] sm:$0xff]  }
  0x83   : > { %1562 = vmatprep.subr.bf16.mxu1 %v1693_v34  ;;  %v1367_v30 = vpack.c.bf16 %v418_v27, %v419_v28 }
  0x84   : > { %1459 = vmatpush3.bf16.msra.mxu0 %v1691_v32  ;;  %v439_v32 = vsel %vm438_vm1, %v436_v17, %v437_v8  ;;  %v414_v48 = vsel %vm413_vm0, %v411_v44, %v412_v46  ;;  %v415_v49 = vsel %vm413_vm0, %v410_v19, %v411_v44  ;;  %v1700_v46 = vld [vmem:[#allocation7] sm:$0xff]   ;;  %v1713_v8 = vld [vmem:[#allocation7 + $0xb8] sm:$0xff]  }
  0x85   : > { %1460 = vmatprep.subr.bf16.mxu0 %v1692_v42  ;;  %v1385_v35 = vpack.c.bf16 %v446_v33, %v439_v32  ;;  %v1373_v50 = vpack.c.bf16 %v414_v48, %v415_v49  ;;  %v1719_v17 = vld [vmem:[#allocation7 + $0x38] sm:$0xff]  }
  0x86   : > { %1563 = vmatpush3.bf16.msra.mxu1 %v1693_v34  ;;  %v462_v34 = vpack.c.bf16 %v2207_v7, %v2166_v55 }
  0x87   : > { %1564 = vmatprep.subr.bf16.mxu1 %v1695_v59 }
  0x88   : > { %1461 = vmatpush3.bf16.msra.mxu0 %v1694_v57  ;;  %v1702_v57 = vld [vmem:[#allocation7 + $0x48] sm:$0xff]  }
  0x89   : > { %1498 = vmatprep.subr.bf16.mxu0 %v1699_v53 }
  0x8a   : > { %1565 = vmatpush3.bf16.msra.mxu1 %v1695_v59  ;;  %v1703_v59 = vld [vmem:[#allocation7 + $0x8] sm:$0xff]  }
  0x8b   : > { %1365 = vmatmul.mubr.msk.bf16.vlgmr.msra.gmra.mrb[0].mxu0 %vm2175_vm7, %v1364_v3  ;;  %1574 = vmatprep.subr.bf16.mxu1 %v1696_v18  ;;  %v1710_v3 = vld [vmem:[#allocation7 + $0xb0] sm:$0xff]  }
  0x8c   : > { %706 = vmatprep.mubr.bf16.mxu0 %v459_v15  ;;  %1499 = vmatpush3.bf16.msra.mxu0 %v1700_v46  ;;  %v1718_v15 = vld [vmem:[#allocation7 + $0x78] sm:$0xff]  }
  0x8d   : > { %1567 = vmatmul.mubr.msk.bf16.vlgmr.msra.gmra.mrb[0].mxu1 %vm2217_vm11, %v1379_v23  ;;  %1500 = vmatprep.subr.bf16.mxu0 %v1702_v57 }
  0x8e   : > { %1570 = vmatprep.mubr.msk.bf16.mxu1 %vm2242_vm13, %v1382_v25  ;;  %1575 = vmatpush3.bf16.msra.mxu1 %v1696_v18 }
  0x8f   : > { %1576 = vmatprep.subr.bf16.mxu1 %v1697_v31 }
  0x90   : > { %1501 = vmatpush3.bf16.msra.mxu0 %v1703_v59 }
  0x91   : > { %1502 = vmatprep.subr.bf16.mxu0 %v1705_v61 }
  0x92   : > { %1577 = vmatpush3.bf16.msra.mxu1 %v1697_v31 }
  0x93   : > { %1368 = vmatmul.mubr.msk.bf16.gmra.mrb[4].mxu0 %vm2228_vm12, %v1367_v30  ;;  %1578 = vmatprep.subr.bf16.mxu1 %v1698_v52 }
  0x94   : > { %714 = vmatprep.mubr.bf16.mxu0 %v462_v34  ;;  %1503 = vmatpush3.bf16.msra.mxu0 %v1706_v62 }
  0x95   : > { %1571 = vmatmul.mubr.msk.bf16.gmra.mrb[4].mxu1 %vm2253_vm14, %v1385_v35  ;;  %1504 = vmatprep.subr.bf16.mxu0 %v1708_v0 }
  0x96   : > { %1579 = vmatpush3.bf16.msra.mxu1 %v1698_v52 }
  0x97   : > { %1580 = vmatprep.subr.bf16.mxu1 %v1701_v56 }
  0x98   : > { %1505 = vmatpush3.bf16.msra.mxu0 %v1709_v2 }
  0x99   : > { %1506 = vmatprep.subr.bf16.mxu0 %v1711_v5 }
  0x9a   : > { %1581 = vmatpush3.bf16.msra.mxu1 %v1701_v56 }
  0x9b   : > { %1371 = vmatmul.mubr.msk.bf16.gmra.mrb[8].mxu0 %vm2288_vm2, %v1370_v41  ;;  %1582 = vmatprep.subr.bf16.mxu1 %v1704_v60 }
  0x9c   : > { %722 = vmatprep.mubr.bf16.mxu0 %v465_v43  ;;  %1507 = vmatpush3.bf16.msra.mxu0 %v1712_v6 }
  0x9d   : > { %1508 = vmatprep.subr.bf16.mxu0 %v1714_v9 }
  0x9e   : > { %1583 = vmatpush3.bf16.msra.mxu1 %v1704_v60 }
  0x9f   : > { %1584 = vmatprep.subr.bf16.mxu1 %v1707_v63 }
  0xa0   : > { %1509 = vmatpush3.bf16.msra.mxu0 %v1715_v11 }
  0xa1   : > { %1510 = vmatprep.subr.bf16.mxu0 %v1716_v13 }
  0xa2   : > { %1585 = vmatpush3.bf16.msra.mxu1 %v1707_v63 }
  0xa3   : > { %1374 = vmatmul.mubr.msk.bf16.gmra.mrb[12].mxu0 %vm2305_vm4, %v1373_v50  ;;  %1586 = vmatprep.subr.bf16.mxu1 %v1710_v3 }
  0xa4   : > { %1511 = vmatpush3.bf16.msra.mxu0 %v1717_v14 }
  0xa5   : > { %1512 = vmatprep.subr.bf16.mxu0 %v1718_v15 }
  0xa6   : > { %1587 = vmatpush3.bf16.msra.mxu1 %v1710_v3 }
  0xa7   : > { %1588 = vmatprep.subr.bf16.mxu1 %v1713_v8 }
  0xa8   : > { %1513 = vmatpush3.bf16.msra.mxu0 %v1719_v17 }
  0xaa   : > { %1589 = vmatpush3.bf16.msra.mxu1 %v1713_v8 }
 0x15e   : > { %v1462_v18 = vpop.f32.mrb[0].mxu0 }
 0x15f   : > { %v1463_v19 = vpop.f32.mrb[1].mxu0 }
 0x160   : > { %v1464_v21 = vadd.f32 %v1463_v19, %v1462_v18  ;;  %v1465_v23 = vpop.f32.mrb[2].mxu0  ;;  %v1568_v25 = vpop.f32.mrb[0].mxu1 }
 0x161   : > { %v1466_v24 = vpop.f32.mrb[3].mxu0  ;;  %v765_v29 = vpop.f32.mrb[1].mxu1 }
 0x162   : > { %v1467_v27 = vadd.f32 %v1466_v24, %v1465_v23  ;;  %v701_v28 = vadd.f32 %v1464_v21, %v2314_v20  ;;  %v1569_v30 = vpop.f32.mrb[2].mxu1 }
 0x163   : > { %v768_v34 = vpop.f32.mrb[3].mxu1 }
 0x164   : > { %v766_v32 = vadd.f32 %v765_v29, %v701_v28  ;;  %v704_v33 = vadd.f32 %v1467_v27, %v2314_v20 }
 0x166   : > { %v2318_v35 = vmax.f32 %v766_v32, 0.0  ;;  %v769_v39 = vadd.f32 %v768_v34, %v704_v33  ;;  %v1468_v40 = vpop.f32.mrb[4].mxu0 }
 0x167   : > { %v1469_v41 = vpop.f32.mrb[5].mxu0 }
 0x168   : > { %v797_v43 = vmax.f32 %v769_v39, 0.0  ;;  %v1470_v44 = vadd.f32 %v1469_v41, %v1468_v40  ;;  %v1471_v45 = vpop.f32.mrb[6].mxu0  ;;  %v804_v48 = vrot.slane %v2318_v35, 7  ;;  %v828_v49 = vrot.slane %v2318_v35, 1  ;;  %v1572_v31 = vpop.f32.mrb[4].mxu1 }
 0x169   : > { %v1472_v50 = vpop.f32.mrb[7].mxu0  ;;  %v781_v57 = vpop.f32.mrb[5].mxu1 }
 0x16a   : > { %v805_v52 = vrot.slane %v797_v43, 7  ;;  %v829_v53 = vrot.slane %v797_v43, 1  ;;  %v709_v46 = vadd.f32 %v1470_v44, %v2314_v20  ;;  %v1473_v56 = vadd.f32 %v1472_v50, %v1471_v45  ;;  %v1573_v60 = vpop.f32.mrb[6].mxu1 }
 0x16b   : > { %v853_v59 = vpack.c.bf16 %v797_v43, %v2318_v35  ;;  %v784_v0 = vpop.f32.mrb[7].mxu1 }
 0x16c   : > { %v2328_v61 = vsel %vm413_vm0, %v804_v48, %v805_v52  ;;  %v774_v62 = vadd.f32 %v1568_v25, %v709_v46  ;;  %v712_v63 = vadd.f32 %v1473_v56, %v2314_v20  ;;  %v842_v2 = vsel %vm438_vm1, %v828_v49, %v829_v53 }
 0x16d   : > { %1095 = vmatprep.mubr.bf16.mxu0 %v853_v59 }
 0x16e   : > { %v2335_v3 = vmax.f32 %v774_v62, 0.0  ;;  %v777_v5 = vadd.f32 %v1569_v30, %v712_v63  ;;  %v1474_v6 = vpop.f32.mrb[8].mxu0 }
 0x16f   : > { %v1475_v8 = vpop.f32.mrb[9].mxu0 }
 0x170   : > { %v806_v9 = vrot.slane %v2335_v3, 7  ;;  %v830_v11 = vrot.slane %v2335_v3, 1  ;;  %v2339_v13 = vmax.f32 %v777_v5, 0.0  ;;  %v1476_v14 = vadd.f32 %v1475_v8, %v1474_v6  ;;  %v1477_v15 = vpop.f32.mrb[10].mxu0 }
 0x171   : > { %v1478_v17 = vpop.f32.mrb[11].mxu0 }
 0x172   : > { %v807_v18 = vrot.slane %v2339_v13, 7  ;;  %v831_v19 = vrot.slane %v2339_v13, 1  ;;  %v1479_v21 = vadd.f32 %v1478_v17, %v1477_v15  ;;  %v717_v23 = vadd.f32 %v1476_v14, %v2314_v20 }
 0x173   : > { %v841_v24 = vsel %vm438_vm1, %v829_v53, %v830_v11  ;;  %v856_v25 = vpack.c.bf16 %v2339_v13, %v2335_v3  ;;  %v817_v27 = vsel %vm413_vm0, %v805_v52, %v806_v9 }
 0x174   : > { %v782_v28 = vadd.f32 %v781_v57, %v717_v23  ;;  %v840_v29 = vsel %vm438_vm1, %v830_v11, %v831_v19  ;;  %v720_v30 = vadd.f32 %v1479_v21, %v2314_v20  ;;  %v1425_v32 = vpack.c.bf16 %v841_v24, %v842_v2 }
 0x175   : > { %v816_v33 = vsel %vm413_vm0, %v806_v9, %v807_v18 }
 0x176   : > { %v800_v34 = vmax.f32 %v782_v28, 0.0  ;;  %v785_v39 = vadd.f32 %v784_v0, %v720_v30  ;;  %1590 = vmatprep.mubr.msk.bf16.mxu1 %vm2201_vm10, %v1425_v32  ;;  %v1480_v40 = vpop.f32.mrb[12].mxu0  ;;  %v1416_v41 = vpack.c.bf16 %v816_v33, %v817_v27 }
 0x177   : > { %v1481_v43 = vpop.f32.mrb[13].mxu0 }
 0x178   : > { %v808_v44 = vrot.slane %v800_v34, 7  ;;  %v832_v45 = vrot.slane %v800_v34, 1  ;;  %v801_v50 = vmax.f32 %v785_v39, 0.0  ;;  %v1482_v52 = vadd.f32 %v1481_v43, %v1480_v40  ;;  %v1483_v53 = vpop.f32.mrb[14].mxu0 }
 0x179   : > { %v1484_v46 = vpop.f32.mrb[15].mxu0 }
 0x17a   : > { %v839_v56 = vsel %vm438_vm1, %v831_v19, %v832_v45  ;;  %v809_v57 = vrot.slane %v801_v50, 7  ;;  %v833_v59 = vrot.slane %v801_v50, 1  ;;  %v725_v62 = vadd.f32 %v1482_v52, %v2314_v20 }
 0x17b   : > { %v1428_v63 = vpack.c.bf16 %v839_v56, %v840_v29  ;;  %v1485_v0 = vadd.f32 %v1484_v46, %v1483_v53  ;;  %v859_v4 = vpack.c.bf16 %v801_v50, %v800_v34  ;;  %v815_v2 = vsel %vm413_vm0, %v807_v18, %v808_v44 }
 0x17c   : > { %v790_v3 = vadd.f32 %v1572_v31, %v725_v62  ;;  %v838_v5 = vsel %vm438_vm1, %v832_v45, %v833_v59  ;;  %v814_v6 = vsel %vm413_vm0, %v808_v44, %v809_v57 }
 0x17d   : > { %v728_v8 = vadd.f32 %v1485_v0, %v2314_v20  ;;  %1591 = vmatmul.mubr.msk.bf16.vlgmr.msra.gmra.mrb[8].mxu1 %vm2217_vm11, %v1428_v63  ;;  %v1419_v9 = vpack.c.bf16 %v814_v6, %v815_v2 }
 0x17e   : > { %v802_v11 = vmax.f32 %v790_v3, 0.0 }
 0x17f   : > { %v793_v13 = vadd.f32 %v1573_v60, %v728_v8 }
 0x180   : > { %v810_v14 = vrot.slane %v802_v11, 7  ;;  %v834_v15 = vrot.slane %v802_v11, 1 }
 0x181   : > { %v803_v17 = vmax.f32 %v793_v13, 0.0 }
 0x182   : > { %v837_v31 = vsel %vm438_vm1, %v833_v59, %v834_v15  ;;  %v813_v18 = vsel %vm413_vm0, %v809_v57, %v810_v14 }
 0x183   : > { %v811_v19 = vrot.slane %v803_v17, 7  ;;  %v835_v21 = vrot.slane %v803_v17, 1  ;;  %v1431_v23 = vpack.c.bf16 %v837_v31, %v838_v5  ;;  %v862_v24 = vpack.c.bf16 %v803_v17, %v802_v11 }
 0x185   : > { %v819_v12 = vsel %vm413_vm0, %v811_v19, %v804_v48  ;;  %1594 = vmatprep.mubr.msk.bf16.mxu1 %vm2242_vm13, %v1431_v23  ;;  %v836_v20 = vsel %vm438_vm1, %v834_v15, %v835_v21  ;;  %v843_v60 = vsel %vm438_vm1, %v835_v21, %v828_v49  ;;  %v812_v27 = vsel %vm413_vm0, %v810_v14, %v811_v19 }
 0x186   : > { %v1413_v28 = vpack.c.bf16 %v2328_v61, %v819_v12  ;;  %v1434_v29 = vpack.c.bf16 %v843_v60, %v836_v20  ;;  %v1422_v30 = vpack.c.bf16 %v812_v27, %v813_v18 }
 0x188   : > { %1414 = vmatmul.mubr.msk.bf16.vlgmr.msra.gmra.mrb[16].mxu0 %vm2175_vm7, %v1413_v28  ;;  %1595 = vmatmul.mubr.msk.bf16.gmra.mrb[12].mxu1 %vm2253_vm14, %v1434_v29 }
 0x189   : > { %1103 = vmatprep.mubr.bf16.mxu0 %v856_v25 }
 0x190   : > { %1417 = vmatmul.mubr.msk.bf16.gmra.mrb[20].mxu0 %vm2228_vm12, %v1416_v41 }
 0x191   : > { %1111 = vmatprep.mubr.bf16.mxu0 %v859_v4 }
 0x198   : > { %1420 = vmatmul.mubr.msk.bf16.gmra.mrb[24].mxu0 %vm2288_vm2, %v1419_v9 }
 0x199   : > { %1119 = vmatprep.mubr.bf16.mxu0 %v862_v24 }
 0x1a0   : > { %1423 = vmatmul.mubr.msk.bf16.gmra.mrb[28].mxu0 %vm2305_vm4, %v1422_v30 }
 0x250   : > { %v1592_v10 = vpop.f32.mrb[8].mxu1 }
 0x251   : > { %v1162_v22 = vpop.f32.mrb[9].mxu1 }
 0x252   : > { %v1593_v35 = vpop.f32.mrb[10].mxu1 }
 0x253   : > { %v1165_v58 = vpop.f32.mrb[11].mxu1 }
 0x25b   : > { %v1514_v48 = vpop.f32.mrb[16].mxu0  ;;  %v1596_v49 = vpop.f32.mrb[12].mxu1 }
 0x25c   : > { %v1515_v16 = vpop.f32.mrb[17].mxu0  ;;  %v1178_v61 = vpop.f32.mrb[13].mxu1 }
 0x25d   : > { %v1516_v25 = vadd.f32 %v1515_v16, %v1514_v48  ;;  %v1517_v32 = vpop.f32.mrb[18].mxu0  ;;  %v1597_v42 = vpop.f32.mrb[14].mxu1 }
 0x25e   : > { %v1518_v33 = vpop.f32.mrb[19].mxu0  ;;  %v1181_v34 = vpop.f32.mrb[15].mxu1 }
 0x25f   : > { %v1098_v51 = vadd.f32 %v1516_v25, %v1387_v26  ;;  %v1519_v39 = vadd.f32 %v1518_v33, %v1517_v32 }
 0x261   : > { %v1163_v40 = vadd.f32 %v1162_v22, %v1098_v51  ;;  %v1101_v41 = vadd.f32 %v1519_v39, %v1387_v26 }
 0x263   : > { %v1193_v43 = vadd.f32 %v1163_v40, %v2132_v36  ;;  %v1166_v44 = vadd.f32 %v1165_v58, %v1101_v41  ;;  %v1520_v45 = vpop.f32.mrb[20].mxu0 }
 0x264   : > { %v1521_v50 = vpop.f32.mrb[21].mxu0 }
 0x265   : > { %v1201_v52 = vmax.f32 %v1193_v43, 0.0  ;;  %v1194_v53 = vadd.f32 %v1166_v44, %v2135_v37  ;;  %v1522_v46 = vadd.f32 %v1521_v50, %v1520_v45  ;;  %v1523_v56 = vpop.f32.mrb[22].mxu0 }
 0x266   : > { %v1524_v57 = vpop.f32.mrb[23].mxu0 }
 0x267   : > { %1209 = vst [vmem:[%s2405_s11] sm:$0xff] %v1201_v52  ;;  %v1202_v59 = vmax.f32 %v1194_v53, 0.0  ;;  %v1106_v62 = vadd.f32 %v1522_v46, %v1387_v26  ;;  %v1525_v63 = vadd.f32 %v1524_v57, %v1523_v56 }
 0x269   : > { %1210 = vst [vmem:[%s2405_s11 + $0x8] sm:$0xff] %v1202_v59  ;;  %v1171_v36 = vadd.f32 %v1592_v10, %v1106_v62  ;;  %v1109_v0 = vadd.f32 %v1525_v63, %v1387_v26 }
 0x26b   : > { %v1195_v4 = vadd.f32 %v1171_v36, %v2150_v47  ;;  %v1174_v37 = vadd.f32 %v1593_v35, %v1109_v0  ;;  %v1526_v2 = vpop.f32.mrb[24].mxu0 }
 0x26c   : > { %v1527_v3 = vpop.f32.mrb[25].mxu0 }
 0x26d   : > { %v1203_v5 = vmax.f32 %v1195_v4, 0.0  ;;  %v1196_v6 = vadd.f32 %v1174_v37, %v2163_v54  ;;  %v1528_v8 = vadd.f32 %v1527_v3, %v1526_v2  ;;  %v1529_v9 = vpop.f32.mrb[26].mxu0 }
 0x26e   : > { %v1530_v11 = vpop.f32.mrb[27].mxu0 }
 0x26f   : > { %1211 = vst [vmem:[%s2405_s11 + $0x10] sm:$0xff] %v1203_v5  ;;  %v1204_v13 = vmax.f32 %v1196_v6, 0.0  ;;  %v1114_v14 = vadd.f32 %v1528_v8, %v1387_v26  ;;  %v1531_v15 = vadd.f32 %v1530_v11, %v1529_v9 }
 0x271   : > { %1212 = vst [vmem:[%s2405_s11 + $0x18] sm:$0xff] %v1204_v13  ;;  %v1179_v17 = vadd.f32 %v1178_v61, %v1114_v14  ;;  %v1117_v31 = vadd.f32 %v1531_v15, %v1387_v26 }
 0x273   : > { %v1197_v47 = vadd.f32 %v1179_v17, %v2166_v55  ;;  %v1182_v18 = vadd.f32 %v1181_v34, %v1117_v31  ;;  %v1532_v19 = vpop.f32.mrb[28].mxu0 }
 0x274   : > { %v1533_v21 = vpop.f32.mrb[29].mxu0 }
 0x275   : > { %v1205_v54 = vmax.f32 %v1197_v47, 0.0  ;;  %v1198_v23 = vadd.f32 %v1182_v18, %v2207_v7  ;;  %v1534_v24 = vadd.f32 %v1533_v21, %v1532_v19  ;;  %v1535_v12 = vpop.f32.mrb[30].mxu0 }
 0x276   : > { %v1536_v20 = vpop.f32.mrb[31].mxu0 }
 0x277   : > { %1213 = vst [vmem:[%s2405_s11 + $0x20] sm:$0xff] %v1205_v54  ;;  %v1206_v60 = vmax.f32 %v1198_v23, 0.0  ;;  %v1122_v27 = vadd.f32 %v1534_v24, %v1387_v26  ;;  %v1537_v28 = vadd.f32 %v1536_v20, %v1535_v12 }
 0x279   : > { %1214 = vst [vmem:[%s2405_s11 + $0x28] sm:$0xff] %v1206_v60  ;;  %v1187_v55 = vadd.f32 %v1596_v49, %v1122_v27  ;;  %v1125_v29 = vadd.f32 %v1537_v28, %v1387_v26 }
 0x27b   : > { %v1199_v30 = vadd.f32 %v1187_v55, %v2192_v1  ;;  %v1190_v10 = vadd.f32 %v1597_v42, %v1125_v29 }
 0x27d   : > { %v1207_v7 = vmax.f32 %v1199_v30, 0.0  ;;  %v1200_v22 = vadd.f32 %v1190_v10, %v2138_v38 }
 0x27f   : > { %1215 = vst [vmem:[%s2405_s11 + $0x30] sm:$0xff] %v1207_v7  ;;  %v1208_v35 = vmax.f32 %v1200_v22, 0.0 }
 0x281   : > { %1216 = vst [vmem:[%s2405_s11 + $0x38] sm:$0xff] %v1208_v35 }
 0x282   : > { %1819 = shalt.err (!%p1816_p2)
}
 0x283   : > { %s1820_s6 = scalar_lea.hbm %s2424_s9, 1024  ;;  %s1824_s8 = scalar_lea.hbm %s2477_s5, 2048 }
 0x284   : > { %p1821_p13 = scmp.ne.s32.totalorder %s2424_s9, %s1820_s6  ;;  %p1825_p4 = scmp.lt.u32.totalorder %s2424_s9, %s2477_s5 }
 0x285   : > { %p1826_p5 = scmp.lt.u32.totalorder %s1824_s8, %s1820_s6  ;;  %p1828_p11 = scmp.lt.u32.totalorder %s1820_s6, %s2424_s9 }
 0x286   : > { %p1822_p6 = pnand %p1821_p13, %p2521_p0 }
 0x287   : > { %p1827_p8 = por %p1826_p5, %p1825_p4 }
 0x288   : > { %p1823_p10 = pneg %p1822_p6 }
 0x289   : > { %p1829_p1 = por %p1828_p11, %p1827_p8 }
 0x28b   : > { %p1830_p3 = pnand %p1829_p1, %p1823_p10 }
 0x28d   : > { %1833 = shalt.err (!%p1830_p3)
}
 0x28e   : > { %s1887_s28 = smov 128   ;;  %s1888_s15 = smov 8  }
 0x28f   : > { %1608 = dma.vmem_to_hbm [thread:$0]  (%p2521_p0), %s2426_s30, 1024, %s2424_s9, %s1218_s12, %s1887_s28, %s1887_s28, %s1888_s15  }
 0x290 PF: > { %s1247_s16 = sand.u32 1, %s1864_s18   ;;  %p2522_p7 = scmp.ne.s32.totalorder %s2482_s25, 0 }
 0x291   : > { %p2523_p9 = scmp.ge.s32.totalorder %s1876_s21, 2  ;;  %s1248_s13 = scalar_lea.sflag [#allocation4], %s1247_s16 }
 0x293   : > { %p1622_p12 = pnand %p2523_p9, %p2522_p7 }
 0x295   : > { %1859 = dma.done.wait (!%p1622_p12), %s1248_s13, 1024  }
 0x296   : > { %1861 = vsyncadd (!%p1622_p12), %s1248_s13, 4294966272  ;;  %p19_p2 = scmp.ge.s32.totalorder %s2029_s14, 4   ;;  %s2524_s18 = smov %s1868_s19 }
 0x297   : > { %s2525_s19 = smov %s1872_s20  ;;  %s2526_s20 = smov %s2045_s27 }
 0x298   : > { %s2527_s21 = smov %s2029_s14  ;;  %21 = sbr.rel (!%p19_p2) target bundleno = 6 (0x6), region = 93 }
 0x29f   :  { %1253 = vsyncpa [#allocation3], 1 }
 0x2a0   :  { %1255 = vsyncpa [#allocation3 + $0x1], 1 }
 0x2a1   :  { %1256 = vsyncpa [#allocation6], 1 }
 0x2a2   :  { %1257 = vsyncpa [#allocation4], 1 }
 0x2a3   :  { %1259 = vsyncpa [#allocation4 + $0x1], 1 }

</bundles_post_ra>
